<compile_context>
chip_gen: v7x
topology: tpu7x:2x2x1
jax: 0.10.0
libtpu: 0.0.40
codegen_flags: <defaults>
</compile_context>

<pallas_src>
import jax
import jax.numpy as jnp
from jax.experimental import pallas as pl
from jax.experimental.pallas import tpu as pltpu

_LANE = 128  # TPU vreg lane width


def _round_up(a, m):
    return ((a + m - 1) // m) * m


def _round_down(a, m):
    return (a // m) * m


# --------------------------------------------------------------------------- #
# Kernels
# --------------------------------------------------------------------------- #
def _layer2_store(h, w2_ref, b2_ref, o_ref):
    # Layer 2: Linear(64 -> 1) as VPU multiply + XLU cross-lane reduce (padded
    # hidden lanes of w2 are zero so they contribute nothing), written as a
    # lane-dense (1, bn) row.  The (bn,) -> (1, bn) relayout is XLU work that
    # scales with bn but hides under the x DMA for realistic input_dim; if a
    # bundle dump ever shows it exposed (tiny D only), chunk this per 128 rows.
    o = jnp.sum(h * w2_ref[...], axis=1) + b2_ref[0]
    o_ref[...] = o.reshape(1, -1).astype(o_ref.dtype)


def _disc_kernel(x_ref, w1_ref, b1_ref, w2_ref, b2_ref, o_ref):
    # Fast path: whole contraction dim D resident (single K step).
    h = jnp.dot(x_ref[...], w1_ref[...], preferred_element_type=jnp.float32)
    h = jnp.maximum(h + b1_ref[...], 0.0)
    _layer2_store(h, w2_ref, b2_ref, o_ref)


def _disc_kernel_ktiled(x_ref, w1_ref, b1_ref, w2_ref, b2_ref, o_ref, acc_ref):
    # Fallback for very large input_dim: K-tiled layer 1, f32 VMEM accumulator.
    k = pl.program_id(1)

    @pl.when(k == 0)
    def _():
        acc_ref[...] = jnp.zeros_like(acc_ref)

    acc_ref[...] += jnp.dot(x_ref[...], w1_ref[...],
                            preferred_element_type=jnp.float32)

    @pl.when(k == pl.num_programs(1) - 1)
    def _():
        h = jnp.maximum(acc_ref[...] + b1_ref[...], 0.0)
        _layer2_store(h, w2_ref, b2_ref, o_ref)


# --------------------------------------------------------------------------- #
# Wrapper
# --------------------------------------------------------------------------- #
def _vmem_budget():
    """Generation-aware (working-set budget, explicit scoped limit) in bytes."""
    cap = 64 * 1024 * 1024  # conservative fallback == v7x physical VMEM per TC
    try:
        cap = int(pltpu.get_tpu_info().vmem_capacity_bytes)
    except Exception:
        pass
    cap = min(max(cap, 32 * 1024 * 1024), 256 * 1024 * 1024)
    # ~3/8 of physical VMEM for the pipelined working set:
    #   v7x 64 MiB -> 24 MiB, v5e/v6e 128 MiB -> 48 MiB.
    budget = min((cap * 3) // 8, 48 * 1024 * 1024)
    # Request the scoped limit explicitly (v5e default is only 16 MiB) with margin.
    limit = min(budget + 8 * 1024 * 1024, cap - 4 * 1024 * 1024)
    return budget, limit


def discriminator_forward(x, w1, b1, w2, b2, *, k_block=None):
    """Eval-mode Discriminator forward.

    x : [N, D] float32 or bfloat16
    w1: [D, H], b1: [H] or [1, H]      (Linear(input_dim, 64), stored [in, out])
    w2: [H, 1] or [H], b2: scalar-like (Linear(64, 1))
    Returns [N] float32 (== PyTorch .view(-1)).
    k_block: optional override forcing the K-tiled layer-1 path with this K tile.
    """
    N, D = x.shape
    H = w1.shape[1]

    # x is the dominant HBM stream: keep its storage dtype (f32 or bf16).
    if x.dtype not in (jnp.float32, jnp.bfloat16):
        x = x.astype(jnp.float32)
    x_item = jnp.dtype(x.dtype).itemsize

    # ---- one-time weight/bias layout plumbing (tiny vs x) --------------------
    H_pad = _round_up(max(H, _LANE), _LANE)
    w1p = jnp.pad(w1.astype(x.dtype), ((0, 0), (0, H_pad - H)))
    b1p = jnp.pad(jnp.reshape(b1, (1, H)).astype(jnp.float32),
                  ((0, 0), (0, H_pad - H)))
    w2p = jnp.pad(jnp.reshape(w2, (1, H)).astype(jnp.float32),
                  ((0, 0), (0, H_pad - H)))
    b2p = jnp.reshape(b2, (1,)).astype(jnp.float32)

    budget, vmem_limit = _vmem_budget()

    # ---- resident-W1 fast path vs K-tiled fallback ----------------------------
    w1_resident = (2 * D * H_pad * x_item) <= budget // 3  # double-buffered
    if k_block is None and w1_resident:
        tk, num_k = D, 1
    else:
        if k_block is not None:
            tk = _round_up(k_block, _LANE)
        else:
            tk = max(_LANE, min(2048, _round_down(
                (budget // 3) // (2 * H_pad * x_item), _LANE)))
        D_pad = _round_up(D, tk)
        if D_pad != D:
            # Zero-pad the contraction dim on BOTH operands (rare fallback path
            # only) so no undefined data enters the accumulation.
            x = jnp.pad(x, ((0, 0), (0, D_pad - D)))
            w1p = jnp.pad(w1p, ((0, D_pad - D), (0, 0)))
        num_k = D_pad // tk

    # ---- batch-tile (bn) selection with full VMEM accounting ------------------
    # per row: x tile (double-buffered) + ~4x (bn, H_pad) f32 for the hidden
    # activation / accumulator / elementwise temporaries + (1, bn) f32 output
    # (double-buffered).  Fixed: weight/bias blocks (double-buffered).
    per_row = 2 * tk * x_item + 4 * H_pad * 4 + 2 * 4
    fixed = 2 * (tk * H_pad * x_item + 3 * H_pad * 4)
    bn_vmem = max(_LANE, _round_down(max(budget - fixed, 0) // per_row, _LANE))
    # ~4 MiB of x per grid step amortizes the ~0.35 us fixed per-step cost.
    bn_target = max(_LANE, _round_down((4 * 1024 * 1024) // (tk * x_item), _LANE))
    bn = max(_LANE, min(bn_vmem, bn_target, _round_up(N, _LANE)))

    grid_n = pl.cdiv(N, bn)
    # Mid-size inputs: split into >= 2 row tiles so both v7x TensorCores get work
    # under the "parallel" axis; only when each tile keeps >= ~1 MiB of x, so the
    # extra ~0.35 us step is noise on single-TC chips (v5e/v6e).
    if grid_n == 1 and N >= 2 * _LANE and N * D * x_item >= 2 * 1024 * 1024:
        bn = _round_up(pl.cdiv(N, 2), _LANE)
        grid_n = pl.cdiv(N, bn)

    cost = pl.CostEstimate(
        flops=2 * N * D * H_pad + 4 * N * H_pad,
        transcendentals=0,
        bytes_accessed=N * D * x_item + D * H_pad * x_item + 3 * H_pad * 4 + N * 4,
    )

    out_shape = jax.ShapeDtypeStruct((1, N), jnp.float32)

    if num_k == 1:
        grid_spec = pltpu.PrefetchScalarGridSpec(
            num_scalar_prefetch=0,
            grid=(grid_n,),
            in_specs=[
                pl.BlockSpec((bn, tk), lambda i: (i, 0)),            # x row tile
                pl.BlockSpec((tk, H_pad), lambda i: (0, 0)),         # W1 (resident)
                pl.BlockSpec((1, H_pad), lambda i: (0, 0)),          # b1
                pl.BlockSpec((1, H_pad), lambda i: (0, 0)),          # w2 row
                pl.BlockSpec(memory_space=pltpu.MemorySpace.SMEM),   # b2 scalar
            ],
            out_specs=pl.BlockSpec((1, bn), lambda i: (0, i)),       # lane-dense
        )
        kernel = _disc_kernel
        dims = ("parallel",)
    else:
        grid_spec = pltpu.PrefetchScalarGridSpec(
            num_scalar_prefetch=0,
            grid=(grid_n, num_k),
            in_specs=[
                pl.BlockSpec((bn, tk), lambda i, k: (i, k)),         # x tile
                pl.BlockSpec((tk, H_pad), lambda i, k: (k, 0)),      # W1 K-slab
                pl.BlockSpec((1, H_pad), lambda i, k: (0, 0)),       # b1
                pl.BlockSpec((1, H_pad), lambda i, k: (0, 0)),       # w2 row
                pl.BlockSpec(memory_space=pltpu.MemorySpace.SMEM),   # b2 scalar
            ],
            out_specs=pl.BlockSpec((1, bn), lambda i, k: (0, i)),
            scratch_shapes=[pltpu.VMEM((bn, H_pad), jnp.float32)],
        )
        kernel = _disc_kernel_ktiled
        dims = ("parallel", "arbitrary")

    out = pl.pallas_call(
        kernel,
        out_shape=out_shape,
        grid_spec=grid_spec,
        compiler_params=pltpu.CompilerParams(
            dimension_semantics=dims,
            vmem_limit_bytes=int(vmem_limit),
        ),
        cost_estimate=cost,
    )(x, w1p, b1p, w2p, b2p)

    return out.reshape(-1)


# --------------------------------------------------------------------------- #
# Self-test
# --------------------------------------------------------------------------- #
def _init_linear(key, fan_in, fan_out):
    """PyTorch-style nn.Linear init: U(-1/sqrt(fan_in), +1/sqrt(fan_in))."""
    kw, kb = jax.random.split(key)
    bound = 1.0 / jnp.sqrt(jnp.float32(fan_in))
    w = jax.random.uniform(kw, (fan_in, fan_out), jnp.float32, -bound, bound)
    b = jax.random.uniform(kb, (1, fan_out), jnp.float32, -bound, bound)
    return w, b


def _reference(x, w1, b1, w2, b2):
    h = jnp.maximum(x @ w1 + b1, 0.0)
    return (h @ w2 + b2).reshape(-1)


if __name__ == "__main__":
    root = jax.random.PRNGKey(0)
    kx1, kw1, kw2, kx2, kw3 = jax.random.split(root, 5)

    # -- spec-sized case: batch=8, input_dim=32, hidden=64 (resident-W1 path) ---
    N, D, H = 8, 32, 64
    x = jax.random.normal(kx1, (N, D), jnp.float32)
    w1, b1 = _init_linear(kw1, D, H)   # Linear(input_dim, 64)
    w2, b2 = _init_linear(kw2, H, 1)   # Linear(64, 1)

    y = jax.block_until_ready(discriminator_forward(x, w1, b1, w2, b2))
    assert y.shape == (N,)
    assert jnp.allclose(y, _reference(x, w1, b1, w2, b2), atol=1e-5, rtol=1e-5)

    # -- ragged batch (N % 128 != 0) + forced K-tiled fallback path --------------
    N2, D2 = 300, 256
    x2 = jax.random.normal(kx2, (N2, D2), jnp.float32)
    w1b, b1b = _init_linear(kw3, D2, H)
    y2 = jax.block_until_ready(
        discriminator_forward(x2, w1b, b1b, w2, b2, k_block=128))
    assert y2.shape == (N2,)
    assert jnp.allclose(y2, _reference(x2, w1b, b1b, w2, b2), atol=1e-4, rtol=1e-4)

    print("KERNEL_OK")
</pallas_src>

<mosaic_0001>
module attributes {stable_mosaic.version = 11 : i64} {
  func.func @_disc_kernel(%arg0: i32, %arg1: memref<128x32xf32, #tpu.memory_space<vmem>>, %arg2: memref<32x128xf32, #tpu.memory_space<vmem>>, %arg3: memref<1x128xf32, #tpu.memory_space<vmem>>, %arg4: memref<1x128xf32, #tpu.memory_space<vmem>>, %arg5: memref<1xf32, #tpu.memory_space<smem>>, %arg6: memref<1x128xf32, #tpu.memory_space<vmem>>) attributes {dimension_semantics = [#tpu.dimension_semantics<parallel>], iteration_bounds = array<i64: 1>, scalar_prefetch = 0 : i64, scratch_operands = 0 : i64, tpu.core_type = #tpu.core_type<tc>, window_params = [{transform_indices = @transform_0, window_bounds = array<i64: 128, 32>}, {pipeline_mode = #tpu.pipeline_mode<synchronous>, transform_indices = @transform_1, window_bounds = array<i64: 32, 128>}, {pipeline_mode = #tpu.pipeline_mode<synchronous>, transform_indices = @transform_2, window_bounds = array<i64: 1, 128>}, {pipeline_mode = #tpu.pipeline_mode<synchronous>, transform_indices = @transform_3, window_bounds = array<i64: 1, 128>}, {transform_indices = @transform_4, window_bounds = array<i64: 1>}, {transform_indices = @transform_5, window_bounds = array<i64: 1, 128>}]} {
    %c0 = arith.constant 0 : index
    %c0_0 = arith.constant 0 : index
    %0 = vector.load %arg1[%c0, %c0_0] : memref<128x32xf32, #tpu.memory_space<vmem>>, vector<128x32xf32>
    %c0_1 = arith.constant 0 : index
    %c0_2 = arith.constant 0 : index
    %1 = vector.load %arg2[%c0_1, %c0_2] : memref<32x128xf32, #tpu.memory_space<vmem>>, vector<32x128xf32>
    %cst = arith.constant dense<0.000000e+00> : vector<128x128xf32>
    %2 = tpu.matmul %0, %1, %cst {dimension_numbers = #tpu.dot_dimension_numbers<[1], [0], [0], [1], [0, 0, 1, 1], [], []>} : vector<128x32xf32>, vector<32x128xf32>, vector<128x128xf32> -> vector<128x128xf32>
    %c0_3 = arith.constant 0 : index
    %c0_4 = arith.constant 0 : index
    %3 = vector.load %arg3[%c0_3, %c0_4] : memref<1x128xf32, #tpu.memory_space<vmem>>, vector<1x128xf32>
    %4 = vector.broadcast %3 : vector<1x128xf32> to vector<128x128xf32>
    %5 = arith.addf %2, %4 : vector<128x128xf32>
    %cst_5 = arith.constant 0.000000e+00 : f32
    %6 = vector.broadcast %cst_5 : f32 to vector<128x128xf32>
    %7 = arith.maximumf %5, %6 : vector<128x128xf32>
    %c0_6 = arith.constant 0 : index
    %c0_7 = arith.constant 0 : index
    %8 = vector.load %arg4[%c0_6, %c0_7] : memref<1x128xf32, #tpu.memory_space<vmem>>, vector<1x128xf32>
    %9 = vector.broadcast %8 : vector<1x128xf32> to vector<128x128xf32>
    %10 = arith.mulf %7, %9 : vector<128x128xf32>
    %cst_8 = arith.constant dense<0.000000e+00> : vector<128xf32>
    %11 = vector.multi_reduction <add>, %10, %cst_8 [1] : vector<128x128xf32> to vector<128xf32>
    %c0_9 = arith.constant 0 : index
    %12 = memref.load %arg5[%c0_9] : memref<1xf32, #tpu.memory_space<smem>>
    %13 = vector.broadcast %12 : f32 to vector<128xf32>
    %14 = arith.addf %11, %13 : vector<128xf32>
    %15 = vector.shape_cast %14 : vector<128xf32> to vector<1x128xf32>
    %c0_10 = arith.constant 0 : index
    %c0_11 = arith.constant 0 : index
    %16 = vector.load %arg6[%c0_10, %c0_11] : memref<1x128xf32, #tpu.memory_space<vmem>>, vector<1x128xf32>
    tpu.vector_store %arg6[%c0_10, %c0_11], %15 {strides = array<i32>} : memref<1x128xf32, #tpu.memory_space<vmem>>, vector<1x128xf32>,
    return
  }
  func.func @transform_0(%arg0: i32) -> (i32, i32) {
    %c0_i32 = arith.constant 0 : i32
    %c0_i32_0 = arith.constant 0 : i32
    return %arg0, %c0_i32 : i32, i32
  }
  func.func @transform_1(%arg0: i32) -> (i32, i32) {
    %c0_i32 = arith.constant 0 : i32
    %c0_i32_0 = arith.constant 0 : i32
    %c0_i32_1 = arith.constant 0 : i32
    return %c0_i32, %c0_i32_0 : i32, i32
  }
  func.func @transform_2(%arg0: i32) -> (i32, i32) {
    %c0_i32 = arith.constant 0 : i32
    %c0_i32_0 = arith.constant 0 : i32
    %c0_i32_1 = arith.constant 0 : i32
    return %c0_i32, %c0_i32_0 : i32, i32
  }
  func.func @transform_3(%arg0: i32) -> (i32, i32) {
    %c0_i32 = arith.constant 0 : i32
    %c0_i32_0 = arith.constant 0 : i32
    %c0_i32_1 = arith.constant 0 : i32
    return %c0_i32, %c0_i32_0 : i32, i32
  }
  func.func @transform_4(%arg0: i32) -> i32 {
    %c0_i32 = arith.constant 0 : i32
    %c0_i32_0 = arith.constant 0 : i32
    return %c0_i32 : i32
  }
  func.func @transform_5(%arg0: i32) -> (i32, i32) {
    %c0_i32 = arith.constant 0 : i32
    %c0_i32_0 = arith.constant 0 : i32
    return %c0_i32, %arg0 : i32, i32
  }
}

</mosaic_0001>

<bundles_post_ra>
// kernel: tpu_custom_call.1
= control target key start
LH: loop header
LB: loop body
LE: loop exit
PB: predicated region body
PF: predicated region fallthrough
CT: control target
= control target key end

     0   :  { %11 = vsyncpa [#allocation4], 0  ;;  %s875_s0 = inlined_call_operand.hbm [shape: f32[8,32], index: 0, kind: input, shape index: {}]   ;;  %s876_s1 = inlined_call_operand.hbm [shape: f32[32,128], index: 1, kind: input, shape index: {}]   ;;  %s877_s2 = inlined_call_operand.vmem [shape: f32[1,128], index: 2, kind: input, shape index: {}]   ;;  %s878_s3 = inlined_call_operand.vmem [shape: f32[1,128], index: 3, kind: input, shape index: {}]   ;;  %s879_s4 = inlined_call_operand.<no memory space> [shape: f32[1], index: 4, kind: input, shape index: {}]   ;;  %s880_s5 = inlined_call_operand.hbm [shape: f32[1,8], index: 5, kind: output, shape index: {}]  }
   0x1   :  { %12 = vsyncpa [#allocation7], 0 }
   0x2   :  { %13 = vsyncpa [#allocation5], 0 }
   0x3   :  { %18 = vsyncadd [#allocation4], 1920  ;;  %s664_s18 = smov [#allocation3]   ;;  %s592_s22 = scalar_lea.hbm %s875_s0, 128 }
   0x4   :  { %s19_s19 = sshll.u32 %s664_s18, 4  ;;  %p593_p0 = scmp.ne.s32.totalorder %s875_s0, %s592_s22  ;;  %s20_s19 = int_to_ptr.vmem [resolvable:$true] %s19_s19 }
   0x5   :  { %p596_p1 = scmp.lt.u32.totalorder %s592_s22, %s875_s0 }
   0x7   :  { %p598_p2 = pnand %p596_p1, %p593_p0 }
   0x9   :  { %601 = shalt.err (!%p598_p2)
}
   0xa   :  { %s602_s27 = scalar_lea.vmem %s20_s19, 128  ;;  %s606_s28 = scalar_lea.vmem %s20_s19, 2048 }
   0xb   :  { %p603_p3 = scmp.ne.s32.totalorder %s20_s19, %s602_s27  ;;  %p607_p4 = scmp.lt.s32.totalorder %s20_s19, %s20_s19 }
   0xc   :  { %p608_p5 = scmp.lt.s32.totalorder %s606_s28, %s602_s27 }
   0xe   :  { %p609_p6 = por %p608_p5, %p607_p4 }
  0x10   :  { %p610_p7 = pnand %p609_p6, %p603_p3 }
  0x12   :  { %613 = shalt.err (!%p610_p7)
}
  0x13   :  { %s665_s29 = smov 128   ;;  %s666_s30 = smov 8  }
  0x14   :  { %25 = dma.hbm_to_vmem [thread:$0]  %s875_s0, 128, %s20_s19, [#allocation4], %s665_s29, %s665_s29, %s666_s30  }
  0x15   :  { %s667_s8 = smov [#allocation6]   ;;  %s614_s12 = scalar_lea.hbm %s876_s1, 512 }
  0x16   :  { %s31_s9 = sshll.u32 %s667_s8, 4  ;;  %p615_p8 = scmp.ne.s32.totalorder %s876_s1, %s614_s12  ;;  %s32_s9 = int_to_ptr.vmem [resolvable:$true] %s31_s9 }
  0x17   :  { %p618_p9 = scmp.lt.u32.totalorder %s614_s12, %s876_s1 }
  0x19   :  { %p620_p10 = pnand %p618_p9, %p615_p8 }
  0x1b   :  { %623 = shalt.err (!%p620_p10)
}
  0x1c   :  { %s624_s17 = scalar_lea.vmem %s32_s9, 512  ;;  %p629_p12 = scmp.lt.s32.totalorder %s32_s9, %s32_s9 }
  0x1d   :  { %p625_p11 = scmp.ne.s32.totalorder %s32_s9, %s624_s17  ;;  %p630_p13 = scmp.lt.s32.totalorder %s624_s17, %s624_s17 }
  0x1f   :  { %p631_p0 = por %p630_p13, %p629_p12 }
  0x21   :  { %p632_p1 = pnand %p631_p0, %p625_p11 }
  0x23   :  { %635 = shalt.err (!%p632_p1)
}
  0x24   :  { %37 = dma.hbm_to_vmem [thread:$0]  %s876_s1, 512, %s32_s9, [#allocation7], %s665_s29, %s665_s29, %s666_s30  }
  0x25   :  { %658 = dma.done.wait [#allocation4], 2048  }
  0x26   :  { %659 = vsyncadd [#allocation4], 4294965248 }
  0x27   :  { %660 = dma.done.wait [#allocation7], 512  }
  0x28   :  { %661 = vsyncadd [#allocation7], 4294966784  ;;  %vm77_vm0 = vcmask 261120   ;;  %v66_v0 = vld [vmem:[#allocation6] sm:$0xff]  ;;  %v67_v1 = vld [vmem:[#allocation6 + $0x8] sm:$0xff]  ;;  %vm387_vm1 = vcmask 130112  }
  0x29   :  { %v68_v2 = vld [vmem:[#allocation6 + $0x10] sm:$0xff]  ;;  %v575_v3 = vpack.c.bf16 %v67_v1, %v66_v0  ;;  %v69_v4 = vld [vmem:[#allocation6 + $0x18] sm:$0xff]  ;;  %v50_v5 = vld [vmem:[#allocation3] sm:$0xff]  ;;  %vm394_vm2 = vcmask 195712   ;;  %vm401_vm3 = vcmask 261312   ;;  %vm408_vm4 = vcmask 326912  }
  0x2a   :  { %v58_v6 = vld [vmem:[#allocation3 + $0x40] sm:$0xff]  ;;  %v579_v7 = vpack.c.bf16 %v69_v4, %v68_v2  ;;  %551 = vmatprep.mubr.msk.f32.mxu0 %vm77_vm0, %v50_v5  ;;  %v51_v8 = vld [vmem:[#allocation3 + $0x8] sm:$0xff]  ;;  %v52_v10 = vld [vmem:[#allocation3 + $0x10] sm:$0xff]  ;;  %vm415_vm5 = vcmask 392512   ;;  %vm422_vm6 = vcmask 458112   ;;  %vm429_vm7 = vcmask 523712  }
  0x2b   :  { %563 = vmatprep.mubr.msk.f32.mxu1 %vm77_vm0, %v58_v6  ;;  %576 = vmatprep.subr.bf16.mxu0 %v575_v3  ;;  %v59_v9 = vld [vmem:[#allocation3 + $0x48] sm:$0xff]  ;;  %v60_v11 = vld [vmem:[#allocation3 + $0x50] sm:$0xff]  ;;  %v53_v12 = vld [vmem:[#allocation3 + $0x18] sm:$0xff]  ;;  %vm436_vm8 = vcmask 589312   ;;  %vm443_vm9 = vcmask 654912   ;;  %vm450_vm10 = vcmask 720512  }
  0x2c   :  { %583 = vmatprep.subr.bf16.mxu1 %v575_v3  ;;  %578 = vmatpush3.bf16.msra.mxu0 %v575_v3  ;;  %v61_v13 = vld [vmem:[#allocation3 + $0x58] sm:$0xff]  ;;  %v54_v14 = vld [vmem:[#allocation3 + $0x20] sm:$0xff]  ;;  %v55_v16 = vld [vmem:[#allocation3 + $0x28] sm:$0xff]  ;;  %vm457_vm11 = vcmask 786112   ;;  %vm464_vm12 = vcmask 851712   ;;  %vm471_vm13 = vcmask 917312  }
  0x2d   :  { %585 = vmatpush3.bf16.msra.mxu1 %v575_v3  ;;  %580 = vmatprep.subr.bf16.mxu0 %v579_v7  ;;  %v62_v15 = vld [vmem:[#allocation3 + $0x60] sm:$0xff]  ;;  %v63_v17 = vld [vmem:[#allocation3 + $0x68] sm:$0xff]  ;;  %v56_v18 = vld [vmem:[#allocation3 + $0x30] sm:$0xff]  ;;  %vm478_vm14 = vcmask 982912   ;;  %vm485_vm15 = vcmask 1048512  }
  0x2e   :  { %584 = vmatprep.subr.bf16.mxu1 %v579_v7  ;;  %v64_v19 = vld [vmem:[#allocation3 + $0x70] sm:$0xff]  ;;  %v57_v20 = vld [vmem:[#allocation3 + $0x38] sm:$0xff]  ;;  %v742_v22 = vld [vmem:[%s877_s2] ss:$0 sm:$0xff] }
  0x2f   :  { %v65_v21 = vld [vmem:[#allocation3 + $0x78] sm:$0xff]  ;;  %v750_v30 = vld [vmem:[%s878_s3] ss:$0 sm:$0xff] }
  0x30   :  { %582 = vmatpush3.bf16.msra.mxu0 %v579_v7 }
  0x31   :  { %586 = vmatpush3.bf16.msra.mxu1 %v579_v7 }
  0x33   :  { %552 = vmatmul.mubr.msk.f32.vlgmr.msra.gmra.mrb[0].mxu0 %vm77_vm0, %v51_v8 }
  0x34   :  { %564 = vmatmul.mubr.msk.f32.vlgmr.msra.gmra.mrb[0].mxu1 %vm77_vm0, %v59_v9  ;;  %554 = vmatprep.mubr.msk.f32.mxu0 %vm77_vm0, %v52_v10 }
  0x35   :  { %566 = vmatprep.mubr.msk.f32.mxu1 %vm77_vm0, %v60_v11 }
  0x37   :  { %555 = vmatmul.mubr.msk.f32.gmra.mrb[2].mxu0 %vm77_vm0, %v53_v12 }
  0x38   :  { %567 = vmatmul.mubr.msk.f32.gmra.mrb[2].mxu1 %vm77_vm0, %v61_v13  ;;  %557 = vmatprep.mubr.msk.f32.mxu0 %vm77_vm0, %v54_v14 }
  0x39   :  { %569 = vmatprep.mubr.msk.f32.mxu1 %vm77_vm0, %v62_v15 }
  0x3b   :  { %558 = vmatmul.mubr.msk.f32.gmra.mrb[4].mxu0 %vm77_vm0, %v55_v16 }
  0x3c   :  { %570 = vmatmul.mubr.msk.f32.gmra.mrb[4].mxu1 %vm77_vm0, %v63_v17  ;;  %560 = vmatprep.mubr.msk.f32.mxu0 %vm77_vm0, %v56_v18 }
  0x3d   :  { %572 = vmatprep.mubr.msk.f32.mxu1 %vm77_vm0, %v64_v19 }
  0x3f   :  { %561 = vmatmul.mubr.msk.f32.gmra.mrb[6].mxu0 %vm77_vm0, %v57_v20 }
  0x40   :  { %573 = vmatmul.mubr.msk.f32.gmra.mrb[6].mxu1 %vm77_vm0, %v65_v21 }
 0x106   :  { %v553_v23 = vpop.f32.mrb[0].mxu0 }
 0x107   :  { %v565_v24 = vpop.f32.mrb[0].mxu1  ;;  %v198_v25 = vadd.f32 %v553_v23, %v742_v22  ;;  %v192_v27 = vpop.f32.mrb[1].mxu0 }
 0x108   :  { %v238_v26 = vadd.f32 %v565_v24, %v742_v22  ;;  %v232_v28 = vpop.f32.mrb[1].mxu1  ;;  %v193_v29 = vadd.f32 %v742_v22, %v192_v27 }
 0x109   :  { %v272_v31 = vmax.f32 %v198_v25, 0.0  ;;  %v233_v34 = vadd.f32 %v742_v22, %v232_v28 }
 0x10a   :  { %v280_v32 = vmax.f32 %v238_v26, 0.0  ;;  %v271_v33 = vmax.f32 %v193_v29, 0.0  ;;  %v556_v35 = vpop.f32.mrb[2].mxu0 }
 0x10b   :  { %v568_v36 = vpop.f32.mrb[2].mxu1  ;;  %v208_v37 = vadd.f32 %v556_v35, %v742_v22  ;;  %v202_v38 = vpop.f32.mrb[3].mxu0  ;;  %v295_v40 = vmul.f32 %v750_v30, %v272_v31  ;;  %v279_v45 = vmax.f32 %v233_v34, 0.0 }
 0x10c   :  { %v303_v39 = vmul.f32 %v750_v30, %v280_v32  ;;  %v248_v41 = vadd.f32 %v568_v36, %v742_v22  ;;  %v242_v42 = vpop.f32.mrb[3].mxu1  ;;  %v203_v48 = vadd.f32 %v742_v22, %v202_v38  ;;  %v294_v51 = vmul.f32 %v750_v30, %v271_v33 }
 0x10d   :  { %v274_v43 = vmax.f32 %v208_v37, 0.0  ;;  %312 = vadd.xlane.f32.xlu0 %v295_v40  ;;  %v243_v49 = vadd.f32 %v742_v22, %v242_v42  ;;  %v302_v61 = vmul.f32 %v750_v30, %v279_v45  ;;  %v791_v33 = vstv %s879_s4  ;;  %s668_s4 = smov [#allocation8]  }
 0x10e   :  { %328 = vadd.xlane.f32.xlu1 %v303_v39  ;;  %v282_v44 = vmax.f32 %v248_v41, 0.0  ;;  %v559_v46 = vpop.f32.mrb[4].mxu0  ;;  %v273_v59 = vmax.f32 %v203_v48, 0.0  ;;  %s495_s22 = sshll.u32 %s668_s4, 4  ;;  %s496_s22 = int_to_ptr.vmem [resolvable:$true] %s495_s22 }
 0x10f   :  { %v571_v47 = vpop.f32.mrb[4].mxu1  ;;  %v297_v50 = vmul.f32 %v750_v30, %v274_v43  ;;  %v212_v52 = vpop.f32.mrb[5].mxu0  ;;  %v218_v54 = vadd.f32 %v559_v46, %v742_v22  ;;  %v281_v60 = vmax.f32 %v243_v49, 0.0  ;;  %s636_s23 = scalar_lea.vmem %s496_s22, 16  ;;  %s640_s24 = scalar_lea.vmem %s496_s22, 32 }
 0x110   :  { %v252_v53 = vpop.f32.mrb[5].mxu1  ;;  %v305_v55 = vmul.f32 %v750_v30, %v282_v44  ;;  %v213_v56 = vadd.f32 %v742_v22, %v212_v52  ;;  %v296_v4 = vmul.f32 %v750_v30, %v273_v59  ;;  %v258_v6 = vadd.f32 %v571_v47, %v742_v22  ;;  %p637_p2 = scmp.ne.s32.totalorder %s496_s22, %s636_s23  ;;  %p641_p3 = scmp.lt.s32.totalorder %s496_s22, %s496_s22 }
 0x111   :  { %310 = vadd.xlane.f32.xlu0 %v294_v51  ;;  %v276_v0 = vmax.f32 %v218_v54, 0.0  ;;  %v304_v5 = vmul.f32 %v750_v30, %v281_v60  ;;  %v253_v7 = vadd.f32 %v742_v22, %v252_v53  ;;  %p642_p4 = scmp.lt.s32.totalorder %s640_s24, %s636_s23 }
 0x112   :  { %316 = vadd.xlane.f32.xlu1 %v297_v50  ;;  %v562_v57 = vpop.f32.mrb[6].mxu0  ;;  %v275_v1 = vmax.f32 %v213_v56, 0.0  ;;  %v284_v12 = vmax.f32 %v258_v6, 0.0 }
 0x113   :  { %v574_v58 = vpop.f32.mrb[6].mxu1  ;;  %v222_v62 = vpop.f32.mrb[7].mxu0  ;;  %v228_v2 = vadd.f32 %v562_v57, %v742_v22  ;;  %v299_v10 = vmul.f32 %v750_v30, %v276_v0  ;;  %v283_v14 = vmax.f32 %v253_v7, 0.0  ;;  %p643_p5 = por %p642_p4, %p641_p3 }
 0x114   :  { %v262_v63 = vpop.f32.mrb[7].mxu1  ;;  %v223_v3 = vadd.f32 %v742_v22, %v222_v62  ;;  %v298_v11 = vmul.f32 %v750_v30, %v275_v1  ;;  %v268_v13 = vadd.f32 %v574_v58, %v742_v22  ;;  %v307_v20 = vmul.f32 %v750_v30, %v284_v12 }
 0x115   :  { %326 = vadd.xlane.f32.xlu0 %v302_v61  ;;  %v278_v8 = vmax.f32 %v228_v2, 0.0  ;;  %v263_v15 = vadd.f32 %v742_v22, %v262_v63  ;;  %v306_v21 = vmul.f32 %v750_v30, %v283_v14  ;;  %v376_v22 = vlaneseq  ;;  %p644_p6 = pnand %p643_p5, %p637_p2 }
 0x116   :  { %332 = vadd.xlane.f32.xlu1 %v305_v55  ;;  %v277_v9 = vmax.f32 %v223_v3, 0.0  ;;  %v286_v18 = vmax.f32 %v268_v13, 0.0 }
 0x117   :  { %v301_v16 = vmul.f32 %v750_v30, %v278_v8  ;;  %v285_v19 = vmax.f32 %v263_v15, 0.0  ;;  %v783_v27 = vand.u32 127, %v376_v22  ;;  %v785_v31 = vshrl.u32 %v376_v22, 7 }
 0x118   :  { %v300_v17 = vmul.f32 %v750_v30, %v277_v9  ;;  %v309_v23 = vmul.f32 %v750_v30, %v286_v18 }
 0x119   :  { %330 = vadd.xlane.f32.xlu0 %v304_v5  ;;  %v308_v24 = vmul.f32 %v750_v30, %v285_v19  ;;  %v382_v32 = vadd.s32 4294967288, %v783_v27  ;;  %v389_v30 = vadd.s32 4294967280, %v783_v27  ;;  %v380_v34 = vsub.s32 %v783_v27, %v785_v31 }
 0x11a   :  { %314 = vadd.xlane.f32.xlu1 %v296_v4  ;;  %v800_v38 = vadd.s32 4294967224, %v783_v27  ;;  %v396_v39 = vadd.s32 4294967272, %v783_v27  ;;  %v806_v42 = vadd.s32 4294967232, %v783_v27  ;;  %v403_v44 = vadd.s32 4294967264, %v783_v27 }
 0x11b   :  { %v385_v40 = vsub.s32 %v382_v32, %v785_v31  ;;  %v392_v43 = vsub.s32 %v389_v30, %v785_v31  ;;  %v811_v46 = vadd.s32 4294967208, %v783_v27  ;;  %v814_v48 = vadd.s32 4294967216, %v783_v27 }
 0x11c   :  { %v410_v50 = vadd.s32 4294967256, %v783_v27  ;;  %v441_v51 = vsub.s32 %v800_v38, %v785_v31  ;;  %v399_v52 = vsub.s32 %v396_v39, %v785_v31  ;;  %v424_v56 = vadd.s32 4294967240, %v783_v27 }
 0x11d   :  { %318 = vadd.xlane.f32.xlu0 %v298_v11  ;;  %v434_v57 = vsub.s32 %v806_v42, %v785_v31  ;;  %v406_v59 = vsub.s32 %v403_v44, %v785_v31  ;;  %v417_v60 = vadd.s32 4294967248, %v783_v27  ;;  %v455_v62 = vsub.s32 %v811_v46, %v785_v31 }
 0x11e   :  { %320 = vadd.xlane.f32.xlu1 %v299_v10  ;;  %v448_v63 = vsub.s32 %v814_v48, %v785_v31  ;;  %v413_v0 = vsub.s32 %v410_v50, %v785_v31  ;;  %v427_v7 = vsub.s32 %v424_v56, %v785_v31  ;;  %v466_v8 = vadd.s32 4294967192, %v783_v27 }
 0x11f   :  { %v420_v10 = vsub.s32 %v417_v60, %v785_v31  ;;  %v459_v15 = vadd.s32 4294967200, %v783_v27 }
 0x121   :  { %322 = vadd.xlane.f32.xlu0 %v300_v17 }
 0x122   :  { %324 = vadd.xlane.f32.xlu1 %v301_v16 }
 0x125   :  { %334 = vadd.xlane.f32.xlu0 %v306_v21  ;;  %v469_v21 = vsub.s32 %v466_v8, %v785_v31 }
 0x126   :  { %336 = vadd.xlane.f32.xlu1 %v307_v20 }
 0x129   :  { %338 = vadd.xlane.f32.xlu0 %v308_v24 }
 0x12a   :  { %340 = vadd.xlane.f32.xlu1 %v309_v23  ;;  %v480_v23 = vadd.s32 4294967176, %v783_v27 }
 0x12c   :  { %v483_v42 = vsub.s32 %v480_v23, %v785_v31 }
 0x19a   :  { %v313_v26 = vpop.xlane.xlu0 %312 }
 0x19b   :  { %v781_v25 = vpop.xlane.xlu1 %328  ;;  %v345_v41 = vadd.f32 %v791_v33, %v313_v26 }
 0x19c   :  { %v353_v20 = vadd.f32 %v791_v33, %v781_v25  ;;  %v462_v25 = vsub.s32 %v459_v15, %v785_v31 }
 0x19d   :  { %v386_v54 = vrot.slane %v345_v41, %v385_v40 }
 0x19e   :  { %v311_v29 = vpop.xlane.xlu0 %310  ;;  %v442_v39 = vrot.slane %v353_v20, %v441_v51 }
 0x19f   :  { %v317_v28 = vpop.xlane.xlu1 %316  ;;  %v344_v35 = vadd.f32 %v791_v33, %v311_v29 }
 0x1a0   :  { %v347_v55 = vadd.f32 %v791_v33, %v317_v28  ;;  %v473_v28 = vadd.s32 4294967184, %v783_v27 }
 0x1a1   :  { %v381_v45 = vrot.slane %v344_v35, %v380_v34 }
 0x1a2   :  { %v327_v37 = vpop.xlane.xlu0 %326  ;;  %v400_v6 = vrot.slane %v347_v55, %v399_v52 }
 0x1a3   :  { %v797_v36 = vpop.xlane.xlu1 %332  ;;  %v388_v61 = vsel %vm387_vm1, %v386_v54, %v381_v45  ;;  %v352_v16 = vadd.f32 %v791_v33, %v327_v37 }
 0x1a4   :  { %v355_v29 = vadd.f32 %v791_v33, %v797_v36 }
 0x1a5   :  { %v435_v35 = vrot.slane %v352_v16, %v434_v57 }
 0x1a6   :  { %v331_v49 = vpop.xlane.xlu0 %330  ;;  %v456_v44 = vrot.slane %v355_v29, %v455_v62 }
 0x1a7   :  { %v315_v47 = vpop.xlane.xlu1 %314  ;;  %v354_v24 = vadd.f32 %v791_v33, %v331_v49 }
 0x1a8   :  { %v346_v53 = vadd.f32 %v791_v33, %v315_v47 }
 0x1a9   :  { %v449_v36 = vrot.slane %v354_v24, %v448_v63 }
 0x1aa   :  { %v393_v58 = vrot.slane %v346_v53, %v392_v43  ;;  %v319_v2 = vpop.xlane.xlu0 %318  ;;  %v476_v43 = vsub.s32 %v473_v28, %v785_v31 }
 0x1ab   :  { %v321_v1 = vpop.xlane.xlu1 %320  ;;  %v348_v5 = vadd.f32 %v791_v33, %v319_v2 }
 0x1ac   :  { %v395_v3 = vsel %vm394_vm2, %v393_v58, %v388_v61  ;;  %v349_v4 = vadd.f32 %v791_v33, %v321_v1 }
 0x1ad   :  { %v407_v9 = vrot.slane %v348_v5, %v406_v59  ;;  %v402_v12 = vsel %vm401_vm3, %v400_v6, %v395_v3 }
 0x1ae   :  { %v414_v11 = vrot.slane %v349_v4, %v413_v0  ;;  %v323_v14 = vpop.xlane.xlu0 %322 }
 0x1af   :  { %v325_v13 = vpop.xlane.xlu1 %324  ;;  %v409_v17 = vsel %vm408_vm4, %v407_v9, %v402_v12  ;;  %v350_v19 = vadd.f32 %v791_v33, %v323_v14 }
 0x1b0   :  { %v351_v18 = vadd.f32 %v791_v33, %v325_v13  ;;  %v416_v32 = vsel %vm415_vm5, %v414_v11, %v409_v17 }
 0x1b1   :  { %v421_v26 = vrot.slane %v350_v19, %v420_v10 }
 0x1b2   :  { %v428_v22 = vrot.slane %v351_v18, %v427_v7  ;;  %v335_v34 = vpop.xlane.xlu0 %334 }
 0x1b3   :  { %v337_v30 = vpop.xlane.xlu1 %336  ;;  %v423_v37 = vsel %vm422_vm6, %v421_v26, %v416_v32  ;;  %v356_v38 = vadd.f32 %v791_v33, %v335_v34 }
 0x1b4   :  { %v430_v40 = vsel %vm429_vm7, %v428_v22, %v423_v37  ;;  %v357_v27 = vadd.f32 %v791_v33, %v337_v30 }
 0x1b5   :  { %v437_v41 = vsel %vm436_vm8, %v435_v35, %v430_v40  ;;  %v463_v49 = vrot.slane %v356_v38, %v462_v25 }
 0x1b6   :  { %v444_v45 = vsel %vm443_vm9, %v442_v39, %v437_v41  ;;  %v339_v47 = vpop.xlane.xlu0 %338  ;;  %v470_v52 = vrot.slane %v357_v27, %v469_v21 }
 0x1b7   :  { %v341_v46 = vpop.xlane.xlu1 %340  ;;  %v451_v48 = vsel %vm450_vm10, %v449_v36, %v444_v45  ;;  %v358_v51 = vadd.f32 %v791_v33, %v339_v47 }
 0x1b8   :  { %v359_v50 = vadd.f32 %v791_v33, %v341_v46  ;;  %v458_v53 = vsel %vm457_vm11, %v456_v44, %v451_v48 }
 0x1b9   :  { %v465_v31 = vsel %vm464_vm12, %v463_v49, %v458_v53  ;;  %v477_v55 = vrot.slane %v358_v51, %v476_v43 }
 0x1ba   :  { %v484_v54 = vrot.slane %v359_v50, %v483_v42  ;;  %v472_v56 = vsel %vm471_vm13, %v470_v52, %v465_v31 }
 0x1bb   :  { %v479_v57 = vsel %vm478_vm14, %v477_v55, %v472_v56 }
 0x1bc   :  { %v486_v58 = vsel %vm485_vm15, %v484_v54, %v479_v57 }
 0x1bd   :  { %488 = vst [vmem:[#allocation8] sm:$0x1] %v486_v58 }
 0x1be   :  { %647 = shalt.err (!%p644_p6)
}
 0x1bf   :  { %s648_s27 = scalar_lea.hbm %s880_s5, 16 }
 0x1c0   :  { %p649_p7 = scmp.ne.s32.totalorder %s880_s5, %s648_s27  ;;  %p652_p8 = scmp.lt.u32.totalorder %s648_s27, %s880_s5 }
 0x1c2   :  { %p654_p9 = pnand %p652_p8, %p649_p7 }
 0x1c4   :  { %657 = shalt.err (!%p654_p9)
}
 0x1c5   :  { %498 = dma.vmem_to_hbm [thread:$0]  %s496_s22, 16, %s880_s5, [#allocation5]  }
 0x1c6   :  { %662 = dma.done.wait [#allocation5], 16  }
 0x1c7   :  { %663 = vsyncadd [#allocation5], 4294967280 }
 0x1c8   :  { %502 = vsyncpa [#allocation4], 1 }
 0x1c9   :  { %503 = vsyncpa [#allocation7], 1 }
 0x1ca   :  { %504 = vsyncpa [#allocation5], 1 }

</bundles_post_ra>
